<compile_context>
chip_gen: v5e
topology: v5e:2x2
jax: 0.10.0
libtpu: 0.0.40
codegen_flags: <defaults>
</compile_context>

<pallas_src>
import functools

import jax
import jax.numpy as jnp
from jax import lax
from jax.experimental import pallas as pl
from jax.experimental.pallas import tpu as pltpu


def _block_kernel(p1_ref, w1_ref, b1_ref, w2_ref, b2_ref, o_ref, h1_ref, *, W):
    """One grid step = B images, flattened spatial axes concatenated on lanes.

    p1_ref : (9*Cin, Mtot)    wrapper-folded conv1 im2col patches, channel-major
    w1_ref : (C1, 9*Cin)      conv1 weights, output-channel major
    b1_ref : (C1, 1)          f32
    w2_ref : (9, C2, C1)      conv2 weights, one (C2, C1) matrix per 3x3 tap
    b2_ref : (C2, 1)          f32
    o_ref  : (C2, Mtot)       channel-major output (pad rows/cols sliced off
                              by the wrapper)
    h1_ref : (C1, Mtot+lpad)  VMEM scratch holding relu(conv1), lane-dense
    """
    Mtot = o_ref.shape[1]
    C1 = w1_ref.shape[0]
    cdt = h1_ref.dtype
    lpad = h1_ref.shape[1] - Mtot

    # ---------------- conv1: ONE MXU matmul, lane-dense output ---------------
    h1 = jnp.dot(w1_ref[...], p1_ref[...], preferred_element_type=jnp.float32)
    h1 = jnp.maximum(h1 + b1_ref[...], 0.0)            # bias + ReLU in f32
    h1_ref[:, :Mtot] = h1.astype(cdt)
    # Right-halo pad so the shifted tap reads below stay in bounds; these
    # columns only ever feed output positions the wrapper slices away.
    h1_ref[:, Mtot:Mtot + lpad] = jnp.zeros((C1, lpad), cdt)

    # ---------------- conv2: 9 accumulated MXU matmuls -----------------------
    # Static lane-shifted views of h1 replace any 9*C1 patch-matrix build:
    # the shifts ride the (otherwise idle) XLU/vld slots instead of the
    # vector-store slot.
    acc = None
    for kh in range(3):
        for kw in range(3):
            t = kh * 3 + kw
            off = kh * W + kw
            part = jnp.dot(w2_ref[t], h1_ref[:, off:off + Mtot],
                           preferred_element_type=jnp.float32)
            acc = part if acc is None else acc + part
    o_ref[...] = (acc + b2_ref[...]).astype(o_ref.dtype)


def block_forward(x_nchw, w1_oihw, b1, w2_oihw, b2, *,
                  use_bf16_matmul=True, images_per_step=None):
    """PyTorch-semantics forward: x NCHW, OIHW weights + bias, returns NCHW."""
    N, Cin, H, W = x_nchw.shape
    C1 = w1_oihw.shape[0]
    C2 = w2_oihw.shape[0]
    H2, W2 = H - 4, W - 4
    assert H2 > 0 and W2 > 0, "image too small for two valid 3x3 convs"

    # bf16 matmul inputs (f32 accumulation, f32 bias/ReLU) for v6e/v7x MXU
    # rate + halved VMEM/DMA bytes.  f32 path preserves exact numerics.
    cdt = jnp.bfloat16 if use_bf16_matmul else x_nchw.dtype

    Mimg = H * W            # per-image lane segment (covers every conv1 row;
                            # W-4 cols / H-4 rows of waste, sliced off below)
    lpad = 2 * W + 2        # halo needed by the largest conv2 tap offset

    # Images per grid step: batch enough per step to amortize pipeline
    # overhead, keep >= 2 steps so both TCs get work on v7x.
    if images_per_step is None:
        images_per_step = max(1, N // 2)
    B = max(1, min(images_per_step, N))
    while N % B:
        B -= 1
    G = N // B
    Mtot = B * Mimg

    # ---- pure XLA layout glue (no compute) ----------------------------------
    # Channel-major flat image with spatial on lanes (lane-dense even at Cin=4).
    x_cm = x_nchw.reshape(N, Cin, Mimg)
    x_cm = jnp.pad(x_cm, ((0, 0), (0, 0), (0, lpad)))
    # conv1 3x3 im2col fold done once in XLA (9x Cin channels).  At small Cin
    # this is far cheaper than building patch matrices through the kernel's
    # single vector-store slot.
    # TODO(synk): for large Cin fold only kw here (3x) and do 3 accumulated
    # kh-matmuls in-kernel to cap the HBM read amplification.
    taps = [kh * W + kw for kh in range(3) for kw in range(3)]
    p1 = jnp.concatenate([x_cm[:, :, t:t + Mimg] for t in taps], axis=1)
    # Fold B images into the lane axis -> (G, 9*Cin, B*Mimg).
    p1 = (p1.reshape(G, B, 9 * Cin, Mimg)
            .transpose(0, 2, 1, 3)
            .reshape(G, 9 * Cin, Mtot)
            .astype(cdt))

    # conv1 weights: OIHW -> (c1, (kh,kw,ci)) so the output is channel-major.
    w1_mat = jnp.transpose(w1_oihw, (0, 2, 3, 1)).reshape(C1, 9 * Cin).astype(cdt)
    # conv2 weights: one (C2, C1) matrix per tap; tap index = kh*3 + kw.
    w2_taps = jnp.transpose(w2_oihw, (2, 3, 0, 1)).reshape(9, C2, C1).astype(cdt)
    b1_col = b1.reshape(C1, 1).astype(jnp.float32)
    b2_col = b2.reshape(C2, 1).astype(jnp.float32)

    kernel = functools.partial(_block_kernel, W=W)

    out = pl.pallas_call(
        kernel,
        out_shape=jax.ShapeDtypeStruct((G, C2, Mtot), x_nchw.dtype),
        grid_spec=pltpu.PrefetchScalarGridSpec(
            num_scalar_prefetch=0,
            grid=(G,),
            in_specs=[
                pl.BlockSpec((None, 9 * Cin, Mtot), lambda g: (g, 0, 0)),
                # Grid-invariant weights/biases: constant index_maps, DMA'd once.
                pl.BlockSpec((C1, 9 * Cin), lambda g: (0, 0)),
                pl.BlockSpec((C1, 1), lambda g: (0, 0)),
                pl.BlockSpec((9, C2, C1), lambda g: (0, 0, 0)),
                pl.BlockSpec((C2, 1), lambda g: (0, 0)),
            ],
            out_specs=pl.BlockSpec((None, C2, Mtot), lambda g: (g, 0, 0)),
            scratch_shapes=[pltpu.VMEM((C1, Mtot + lpad), cdt)],
        ),
        compiler_params=pltpu.CompilerParams(
            dimension_semantics=("parallel",)),
    )(p1, w1_mat, b1_col, w2_taps, b2_col)

    # Unfold images from the lane axis; drop the bottom 4 rows / right 4
    # columns (they hold out-of-window garbage by construction) -> NCHW.
    out = (out.reshape(G, C2, B, Mimg)
              .transpose(0, 2, 1, 3)
              .reshape(N, C2, H, W))
    return out[:, :, :H2, :W2]


def reference_forward(x, w1, b1, w2, b2):
    """Pure-JAX reference with PyTorch semantics (NCHW / OIHW, valid conv)."""
    dn = ('NCHW', 'OIHW', 'NCHW')
    y = lax.conv_general_dilated(x, w1, (1, 1), 'VALID', dimension_numbers=dn)
    y = y + b1[None, :, None, None]
    y = jnp.maximum(y, 0.0)
    y = lax.conv_general_dilated(y, w2, (1, 1), 'VALID', dimension_numbers=dn)
    y = y + b2[None, :, None, None]
    return y


if __name__ == "__main__":
    key = jax.random.PRNGKey(0)
    k1, k2, k3, k4, k5 = jax.random.split(key, 5)

    # Small shapes consistent with Block(inChannels=4, outChannels=8)
    N, Cin, H, W = 2, 4, 16, 16
    Cout = 8

    x = jax.random.normal(k1, (N, Cin, H, W), jnp.float32)
    # Deterministic synthetic parameters (PyTorch Conv2d shapes: OIHW + bias)
    w1 = jax.random.normal(k2, (Cout, Cin, 3, 3), jnp.float32) * 0.1
    b1 = jax.random.normal(k3, (Cout,), jnp.float32) * 0.1
    w2 = jax.random.normal(k4, (Cout, Cout, 3, 3), jnp.float32) * 0.1
    b2 = jax.random.normal(k5, (Cout,), jnp.float32) * 0.1

    ref = reference_forward(x, w1, b1, w2, b2)

    # Exact-numerics path (f32 matmul inputs).
    out_f32 = jax.block_until_ready(
        block_forward(x, w1, b1, w2, b2, use_bf16_matmul=False))
    assert out_f32.shape == ref.shape == (N, Cout, H - 4, W - 4), out_f32.shape
    assert jnp.allclose(out_f32, ref, atol=1e-4, rtol=1e-4), \
        float(jnp.max(jnp.abs(out_f32 - ref)))

    # Default fast path: bf16 matmul inputs, f32 accumulation (v6e/v7x MXU).
    out_bf16 = jax.block_until_ready(block_forward(x, w1, b1, w2, b2))
    assert out_bf16.shape == ref.shape, out_bf16.shape
    assert jnp.allclose(out_bf16, ref, atol=3e-2, rtol=3e-2), \
        float(jnp.max(jnp.abs(out_bf16 - ref)))

    print("KERNEL_OK")
</pallas_src>

<mosaic_0001>
module attributes {stable_mosaic.version = 11 : i64} {
  func.func @_block_kernel(%arg0: i32, %arg1: memref<1x36x256xf32, #tpu.memory_space<vmem>>, %arg2: memref<8x36xf32, #tpu.memory_space<vmem>>, %arg3: memref<8x1xf32, #tpu.memory_space<vmem>>, %arg4: memref<9x8x8xf32, #tpu.memory_space<vmem>>, %arg5: memref<8x1xf32, #tpu.memory_space<vmem>>, %arg6: memref<1x8x256xf32, #tpu.memory_space<vmem>>, %arg7: memref<8x290xf32, #tpu.memory_space<vmem>>) attributes {dimension_semantics = [#tpu.dimension_semantics<parallel>], iteration_bounds = array<i64: 2>, scalar_prefetch = 0 : i64, scratch_operands = 1 : i64, tpu.core_type = #tpu.core_type<tc>, window_params = [{transform_indices = @transform_0, window_bounds = array<i64: 1, 36, 256>}, {pipeline_mode = #tpu.pipeline_mode<synchronous>, transform_indices = @transform_1, window_bounds = array<i64: 8, 36>}, {pipeline_mode = #tpu.pipeline_mode<synchronous>, transform_indices = @transform_2, window_bounds = array<i64: 8, 1>}, {pipeline_mode = #tpu.pipeline_mode<synchronous>, transform_indices = @transform_3, window_bounds = array<i64: 9, 8, 8>}, {pipeline_mode = #tpu.pipeline_mode<synchronous>, transform_indices = @transform_4, window_bounds = array<i64: 8, 1>}, {transform_indices = @transform_5, window_bounds = array<i64: 1, 8, 256>}]} {
    %c0 = arith.constant 0 : index
    %c0_0 = arith.constant 0 : index
    %0 = vector.load %arg2[%c0, %c0_0] : memref<8x36xf32, #tpu.memory_space<vmem>>, vector<8x36xf32>
    %c0_1 = arith.constant 0 : index
    %c0_2 = arith.constant 0 : index
    %c0_3 = arith.constant 0 : index
    %1 = vector.load %arg1[%c0_1, %c0_2, %c0_3] : memref<1x36x256xf32, #tpu.memory_space<vmem>>, vector<1x36x256xf32>
    %2 = vector.shape_cast %1 : vector<1x36x256xf32> to vector<36x256xf32>
    %cst = arith.constant dense<0.000000e+00> : vector<8x256xf32>
    %3 = tpu.matmul %0, %2, %cst {dimension_numbers = #tpu.dot_dimension_numbers<[1], [0], [0], [1], [0, 0, 1, 1], [], []>} : vector<8x36xf32>, vector<36x256xf32>, vector<8x256xf32> -> vector<8x256xf32>
    %c0_4 = arith.constant 0 : index
    %c0_5 = arith.constant 0 : index
    %4 = vector.load %arg3[%c0_4, %c0_5] : memref<8x1xf32, #tpu.memory_space<vmem>>, vector<8x1xf32>
    %5 = vector.broadcast %4 : vector<8x1xf32> to vector<8x256xf32>
    %6 = arith.addf %3, %5 : vector<8x256xf32>
    %cst_6 = arith.constant 0.000000e+00 : f32
    %7 = vector.broadcast %cst_6 : f32 to vector<8x256xf32>
    %8 = arith.maximumf %6, %7 : vector<8x256xf32>
    %c0_7 = arith.constant 0 : index
    %c0_8 = arith.constant 0 : index
    %9 = vector.load %arg7[%c0_7, %c0_8] : memref<8x290xf32, #tpu.memory_space<vmem>>, vector<8x256xf32>
    tpu.vector_store %arg7[%c0_7, %c0_8], %8 {strides = array<i32>} : memref<8x290xf32, #tpu.memory_space<vmem>>, vector<8x256xf32>,
    %cst_9 = arith.constant 0.000000e+00 : f32
    %10 = vector.broadcast %cst_9 : f32 to vector<8x34xf32>
    %c0_10 = arith.constant 0 : index
    %c256 = arith.constant 256 : index
    %11 = vector.load %arg7[%c0_10, %c256] : memref<8x290xf32, #tpu.memory_space<vmem>>, vector<8x34xf32>
    tpu.vector_store %arg7[%c0_10, %c256], %10 {strides = array<i32>} : memref<8x290xf32, #tpu.memory_space<vmem>>, vector<8x34xf32>,
    %c0_11 = arith.constant 0 : index
    %c0_12 = arith.constant 0 : index
    %c0_13 = arith.constant 0 : index
    %12 = vector.load %arg4[%c0_11, %c0_12, %c0_13] : memref<9x8x8xf32, #tpu.memory_space<vmem>>, vector<1x8x8xf32>
    %13 = vector.shape_cast %12 : vector<1x8x8xf32> to vector<8x8xf32>
    %c0_14 = arith.constant 0 : index
    %c0_15 = arith.constant 0 : index
    %14 = vector.load %arg7[%c0_14, %c0_15] : memref<8x290xf32, #tpu.memory_space<vmem>>, vector<8x256xf32>
    %cst_16 = arith.constant dense<0.000000e+00> : vector<8x256xf32>
    %15 = tpu.matmul %13, %14, %cst_16 {dimension_numbers = #tpu.dot_dimension_numbers<[1], [0], [0], [1], [0, 0, 1, 1], [], []>} : vector<8x8xf32>, vector<8x256xf32>, vector<8x256xf32> -> vector<8x256xf32>
    %c1 = arith.constant 1 : index
    %c0_17 = arith.constant 0 : index
    %c0_18 = arith.constant 0 : index
    %16 = vector.load %arg4[%c1, %c0_17, %c0_18] : memref<9x8x8xf32, #tpu.memory_space<vmem>>, vector<1x8x8xf32>
    %17 = vector.shape_cast %16 : vector<1x8x8xf32> to vector<8x8xf32>
    %c0_19 = arith.constant 0 : index
    %c1_20 = arith.constant 1 : index
    %18 = vector.load %arg7[%c0_19, %c1_20] : memref<8x290xf32, #tpu.memory_space<vmem>>, vector<8x256xf32>
    %cst_21 = arith.constant dense<0.000000e+00> : vector<8x256xf32>
    %19 = tpu.matmul %17, %18, %cst_21 {dimension_numbers = #tpu.dot_dimension_numbers<[1], [0], [0], [1], [0, 0, 1, 1], [], []>} : vector<8x8xf32>, vector<8x256xf32>, vector<8x256xf32> -> vector<8x256xf32>
    %20 = arith.addf %15, %19 : vector<8x256xf32>
    %c2 = arith.constant 2 : index
    %c0_22 = arith.constant 0 : index
    %c0_23 = arith.constant 0 : index
    %21 = vector.load %arg4[%c2, %c0_22, %c0_23] : memref<9x8x8xf32, #tpu.memory_space<vmem>>, vector<1x8x8xf32>
    %22 = vector.shape_cast %21 : vector<1x8x8xf32> to vector<8x8xf32>
    %c0_24 = arith.constant 0 : index
    %c2_25 = arith.constant 2 : index
    %23 = vector.load %arg7[%c0_24, %c2_25] : memref<8x290xf32, #tpu.memory_space<vmem>>, vector<8x256xf32>
    %cst_26 = arith.constant dense<0.000000e+00> : vector<8x256xf32>
    %24 = tpu.matmul %22, %23, %cst_26 {dimension_numbers = #tpu.dot_dimension_numbers<[1], [0], [0], [1], [0, 0, 1, 1], [], []>} : vector<8x8xf32>, vector<8x256xf32>, vector<8x256xf32> -> vector<8x256xf32>
    %25 = arith.addf %20, %24 : vector<8x256xf32>
    %c3 = arith.constant 3 : index
    %c0_27 = arith.constant 0 : index
    %c0_28 = arith.constant 0 : index
    %26 = vector.load %arg4[%c3, %c0_27, %c0_28] : memref<9x8x8xf32, #tpu.memory_space<vmem>>, vector<1x8x8xf32>
    %27 = vector.shape_cast %26 : vector<1x8x8xf32> to vector<8x8xf32>
    %c0_29 = arith.constant 0 : index
    %c16 = arith.constant 16 : index
    %28 = vector.load %arg7[%c0_29, %c16] : memref<8x290xf32, #tpu.memory_space<vmem>>, vector<8x256xf32>
    %cst_30 = arith.constant dense<0.000000e+00> : vector<8x256xf32>
    %29 = tpu.matmul %27, %28, %cst_30 {dimension_numbers = #tpu.dot_dimension_numbers<[1], [0], [0], [1], [0, 0, 1, 1], [], []>} : vector<8x8xf32>, vector<8x256xf32>, vector<8x256xf32> -> vector<8x256xf32>
    %30 = arith.addf %25, %29 : vector<8x256xf32>
    %c4 = arith.constant 4 : index
    %c0_31 = arith.constant 0 : index
    %c0_32 = arith.constant 0 : index
    %31 = vector.load %arg4[%c4, %c0_31, %c0_32] : memref<9x8x8xf32, #tpu.memory_space<vmem>>, vector<1x8x8xf32>
    %32 = vector.shape_cast %31 : vector<1x8x8xf32> to vector<8x8xf32>
    %c0_33 = arith.constant 0 : index
    %c17 = arith.constant 17 : index
    %33 = vector.load %arg7[%c0_33, %c17] : memref<8x290xf32, #tpu.memory_space<vmem>>, vector<8x256xf32>
    %cst_34 = arith.constant dense<0.000000e+00> : vector<8x256xf32>
    %34 = tpu.matmul %32, %33, %cst_34 {dimension_numbers = #tpu.dot_dimension_numbers<[1], [0], [0], [1], [0, 0, 1, 1], [], []>} : vector<8x8xf32>, vector<8x256xf32>, vector<8x256xf32> -> vector<8x256xf32>
    %35 = arith.addf %30, %34 : vector<8x256xf32>
    %c5 = arith.constant 5 : index
    %c0_35 = arith.constant 0 : index
    %c0_36 = arith.constant 0 : index
    %36 = vector.load %arg4[%c5, %c0_35, %c0_36] : memref<9x8x8xf32, #tpu.memory_space<vmem>>, vector<1x8x8xf32>
    %37 = vector.shape_cast %36 : vector<1x8x8xf32> to vector<8x8xf32>
    %c0_37 = arith.constant 0 : index
    %c18 = arith.constant 18 : index
    %38 = vector.load %arg7[%c0_37, %c18] : memref<8x290xf32, #tpu.memory_space<vmem>>, vector<8x256xf32>
    %cst_38 = arith.constant dense<0.000000e+00> : vector<8x256xf32>
    %39 = tpu.matmul %37, %38, %cst_38 {dimension_numbers = #tpu.dot_dimension_numbers<[1], [0], [0], [1], [0, 0, 1, 1], [], []>} : vector<8x8xf32>, vector<8x256xf32>, vector<8x256xf32> -> vector<8x256xf32>
    %40 = arith.addf %35, %39 : vector<8x256xf32>
    %c6 = arith.constant 6 : index
    %c0_39 = arith.constant 0 : index
    %c0_40 = arith.constant 0 : index
    %41 = vector.load %arg4[%c6, %c0_39, %c0_40] : memref<9x8x8xf32, #tpu.memory_space<vmem>>, vector<1x8x8xf32>
    %42 = vector.shape_cast %41 : vector<1x8x8xf32> to vector<8x8xf32>
    %c0_41 = arith.constant 0 : index
    %c32 = arith.constant 32 : index
    %43 = vector.load %arg7[%c0_41, %c32] : memref<8x290xf32, #tpu.memory_space<vmem>>, vector<8x256xf32>
    %cst_42 = arith.constant dense<0.000000e+00> : vector<8x256xf32>
    %44 = tpu.matmul %42, %43, %cst_42 {dimension_numbers = #tpu.dot_dimension_numbers<[1], [0], [0], [1], [0, 0, 1, 1], [], []>} : vector<8x8xf32>, vector<8x256xf32>, vector<8x256xf32> -> vector<8x256xf32>
    %45 = arith.addf %40, %44 : vector<8x256xf32>
    %c7 = arith.constant 7 : index
    %c0_43 = arith.constant 0 : index
    %c0_44 = arith.constant 0 : index
    %46 = vector.load %arg4[%c7, %c0_43, %c0_44] : memref<9x8x8xf32, #tpu.memory_space<vmem>>, vector<1x8x8xf32>
    %47 = vector.shape_cast %46 : vector<1x8x8xf32> to vector<8x8xf32>
    %c0_45 = arith.constant 0 : index
    %c33 = arith.constant 33 : index
    %48 = vector.load %arg7[%c0_45, %c33] : memref<8x290xf32, #tpu.memory_space<vmem>>, vector<8x256xf32>
    %cst_46 = arith.constant dense<0.000000e+00> : vector<8x256xf32>
    %49 = tpu.matmul %47, %48, %cst_46 {dimension_numbers = #tpu.dot_dimension_numbers<[1], [0], [0], [1], [0, 0, 1, 1], [], []>} : vector<8x8xf32>, vector<8x256xf32>, vector<8x256xf32> -> vector<8x256xf32>
    %50 = arith.addf %45, %49 : vector<8x256xf32>
    %c8 = arith.constant 8 : index
    %c0_47 = arith.constant 0 : index
    %c0_48 = arith.constant 0 : index
    %51 = vector.load %arg4[%c8, %c0_47, %c0_48] : memref<9x8x8xf32, #tpu.memory_space<vmem>>, vector<1x8x8xf32>
    %52 = vector.shape_cast %51 : vector<1x8x8xf32> to vector<8x8xf32>
    %c0_49 = arith.constant 0 : index
    %c34 = arith.constant 34 : index
    %53 = vector.load %arg7[%c0_49, %c34] : memref<8x290xf32, #tpu.memory_space<vmem>>, vector<8x256xf32>
    %cst_50 = arith.constant dense<0.000000e+00> : vector<8x256xf32>
    %54 = tpu.matmul %52, %53, %cst_50 {dimension_numbers = #tpu.dot_dimension_numbers<[1], [0], [0], [1], [0, 0, 1, 1], [], []>} : vector<8x8xf32>, vector<8x256xf32>, vector<8x256xf32> -> vector<8x256xf32>
    %55 = arith.addf %50, %54 : vector<8x256xf32>
    %c0_51 = arith.constant 0 : index
    %c0_52 = arith.constant 0 : index
    %56 = vector.load %arg5[%c0_51, %c0_52] : memref<8x1xf32, #tpu.memory_space<vmem>>, vector<8x1xf32>
    %57 = vector.broadcast %56 : vector<8x1xf32> to vector<8x256xf32>
    %58 = arith.addf %55, %57 : vector<8x256xf32>
    %c0_53 = arith.constant 0 : index
    %c0_54 = arith.constant 0 : index
    %c0_55 = arith.constant 0 : index
    %59 = vector.load %arg6[%c0_53, %c0_54, %c0_55] : memref<1x8x256xf32, #tpu.memory_space<vmem>>, vector<1x8x256xf32>
    %60 = vector.shape_cast %59 : vector<1x8x256xf32> to vector<8x256xf32>
    %61 = vector.shape_cast %58 : vector<8x256xf32> to vector<1x8x256xf32>
    tpu.vector_store %arg6[%c0_53, %c0_54, %c0_55], %61 {strides = array<i32>} : memref<1x8x256xf32, #tpu.memory_space<vmem>>, vector<1x8x256xf32>,
    return
  }
  func.func @transform_0(%arg0: i32) -> (i32, i32, i32) {
    %c0_i32 = arith.constant 0 : i32
    %c0_i32_0 = arith.constant 0 : i32
    %c0_i32_1 = arith.constant 0 : i32
    return %arg0, %c0_i32, %c0_i32_0 : i32, i32, i32
  }
  func.func @transform_1(%arg0: i32) -> (i32, i32) {
    %c0_i32 = arith.constant 0 : i32
    %c0_i32_0 = arith.constant 0 : i32
    %c0_i32_1 = arith.constant 0 : i32
    return %c0_i32, %c0_i32_0 : i32, i32
  }
  func.func @transform_2(%arg0: i32) -> (i32, i32) {
    %c0_i32 = arith.constant 0 : i32
    %c0_i32_0 = arith.constant 0 : i32
    %c0_i32_1 = arith.constant 0 : i32
    return %c0_i32, %c0_i32_0 : i32, i32
  }
  func.func @transform_3(%arg0: i32) -> (i32, i32, i32) {
    %c0_i32 = arith.constant 0 : i32
    %c0_i32_0 = arith.constant 0 : i32
    %c0_i32_1 = arith.constant 0 : i32
    %c0_i32_2 = arith.constant 0 : i32
    return %c0_i32, %c0_i32_0, %c0_i32_1 : i32, i32, i32
  }
  func.func @transform_4(%arg0: i32) -> (i32, i32) {
    %c0_i32 = arith.constant 0 : i32
    %c0_i32_0 = arith.constant 0 : i32
    %c0_i32_1 = arith.constant 0 : i32
    return %c0_i32, %c0_i32_0 : i32, i32
  }
  func.func @transform_5(%arg0: i32) -> (i32, i32, i32) {
    %c0_i32 = arith.constant 0 : i32
    %c0_i32_0 = arith.constant 0 : i32
    %c0_i32_1 = arith.constant 0 : i32
    return %arg0, %c0_i32, %c0_i32_0 : i32, i32, i32
  }
}

</mosaic_0001>

<bundles_post_ra>
// kernel: tpu_custom_call.1
= control target key start
LH: loop header
LB: loop body
LE: loop exit
PB: predicated region body
PF: predicated region fallthrough
CT: control target
= control target key end

     0   :  { %10 = vsyncpa [#allocation4], 0  ;;  %s1282_s0 = inlined_call_operand.vmem [shape: f32[2,36,256], index: 0, kind: input, shape index: {}]   ;;  %s1283_s1 = inlined_call_operand.vmem [shape: f32[8,36], index: 1, kind: input, shape index: {}]   ;;  %s1284_s2 = inlined_call_operand.vmem [shape: f32[8,1], index: 2, kind: input, shape index: {}]   ;;  %s1285_s3 = inlined_call_operand.vmem [shape: f32[9,8,8], index: 3, kind: input, shape index: {}]   ;;  %s1286_s4 = inlined_call_operand.vmem [shape: f32[8,1], index: 4, kind: input, shape index: {}]   ;;  %s1287_s5 = inlined_call_operand.hbm [shape: f32[2,8,256], index: 5, kind: output, shape index: {}]  }
   0x1   :  { %12 = vsyncpa [#allocation4 + $0x1], 0  ;;  %s1134_s18 = smov 0   ;;  %s1136_s19 = smov 0  }
   0x2   :  { %s1138_s20 = smov 0   ;;  %s1140_s21 = smov 0  }
   0x3 LB: > { %s1155_s22 = sadd.s32 4294967295, %s1092_s21   ;;  %s896_s23 = sadd.s32 4294967294, %s1092_s21   ;;  %s1092_s21 = sphi %s1140_s21, %s1293_s21   ;;  %s1088_s20 = sphi %s1138_s20, %s1292_s20   ;;  %s1084_s19 = sphi %s1136_s19, %s1291_s19   ;;  %s1080_s18 = sphi %s1134_s18, %s1290_s18  }
   0x4   : > { %s1159_s24 = sadd.s32 1, %s1092_s21   ;;  %s135_s25 = sadd.s32 1, %s1088_s20 }
   0x5   : > { %s132_s26 = ssub.s32 %s1092_s21, %s1159_s24  ;;  %p145_p0 = scmp.ne.s32.totalorder %s1088_s20, %s1084_s19 }
   0x6   : > { %p133_p1 = scmp.eq.s32.totalorder %s132_s26, 0  ;;  %p146_p2 = scmp.eq.s32.totalorder %s1155_s22, 1 }
   0x7   : > { %p151_p3 = scmp.ne.s32.totalorder %s1084_s19, %s1080_s18  ;;  %p152_p4 = scmp.eq.s32.totalorder %s896_s23, 1 }
   0x8   : > { %s1170_s27 = scalar_select %p133_p1, %s1088_s20, %s135_s25  }
   0x9   : > { %p1172_p5 = por %p146_p2, %p145_p0  ;;  %p1176_p6 = por %p152_p4, %p151_p3 }
   0xa   : > { %p899_p7 = scmp.ge.s32.totalorder %s1092_s21, 1  ;;  %p190_p8 = scmp.lt.s32.totalorder %s1092_s21, 3 }
   0xc   : > { %p191_p9 = pnand %p899_p7, %p190_p8 }
   0xd   : > { %p218_p10 = scmp.lt.s32.totalorder (!%p191_p9), %s1155_s22, 1  ;;  %s1096_s12 = smov (!%p191_p9), 126  }
   0xe   : > { %194 = sbr.rel (%p191_p9) target bundleno = 460 (0x1cc), region = 40  ;;  %s1097_s13 = smov (!%p191_p9), 127  }
   0xf   : > { %s1098_s16 = smov (!%p191_p9), 111   ;;  %s1099_s17 = smov (!%p191_p9), 110  }
  0x10   : > { %s1100_s23 = smov (!%p191_p9), 112   ;;  %s1101_s25 = smov (!%p191_p9), 96  }
  0x11   : > { %s1102_s26 = smov (!%p191_p9), 95   ;;  %s1103_s30 = smov (!%p191_p9), 94  }
  0x12   : > { %s215_s10 = sand.u32 (!%p191_p9), 1, %s1084_s19  }
  0x13   : > { %v234_v0 = vld [vmem:[%s1284_s2] sm:$0xff]  ;;  %v1094_v1 = vmov 0   ;;  %vm295_vm0 = vcmask 277504   ;;  %s219_s7 = scalar_select %p218_p10, %s1155_s22, 1  ;;  %v1095_v2 = vmov 0.0   ;;  %vm244_vm1 = vcmask 1043456  }
  0x14   : > { %988 = vset.pattern.permute.xlu0 %v1094_v1  ;;  %1029 = vset.pattern.permute.xlu2 %v1094_v1  ;;  %296 = vst.msk [vmem:[#allocation2 + $0x10] sm:$0xff] %vm295_vm0, %v1095_v2  ;;  %v223_v14 = vld [vmem:[%s1283_s1] sm:$0xff]  ;;  %vm240_vm2 = vcmask 293888   ;;  %vm412_vm3 = vcmask 1031168   ;;  %vm312_vm4 = vcmask 1039360   ;;  %vm317_vm5 = vcmask 64512  }
  0x15   : > { %237 = vperm.xlu0 %988, %v234_v0   ;;  %s938_s8 = smul.u32 80, %s219_s7  ;;  %v906_v38 = vld [vmem:[%s1285_s3 + $0x8] sm:$0xff]  ;;  %vm470_vm6 = vcmask 916480   ;;  %v911_v42 = vld [vmem:[%s1285_s3 + $0x10] sm:$0xff]  ;;  %v810_v44 = vld [vmem:[%s1286_s4] sm:$0xff]  ;;  %vm528_vm7 = vcmask 908288  }
  0x16   : > { %vm644_vm8 = vcmask 785408   ;;  %v297_v54 = vld [vmem:[%s1285_s3] sm:$0xff]  ;;  %vm702_vm9 = vcmask 777216   ;;  %vm586_vm10 = vcmask 900096   ;;  %v914_v0 = vld [vmem:[%s1285_s3 + $0x18] sm:$0xff]  ;;  %vm760_vm11 = vcmask 769024  }
  0x17   : > { %s222_s11 = scalar_lea.vmem %s1282_s0, %s938_s8  ;;  %v917_v56 = vld [vmem:[%s1285_s3 + $0x20] sm:$0xff]  ;;  %s1050_s7 = scalar_lea.hbm %s1287_s5, 32 }
  0x18   : > { %v232_v3 = vld [vmem:[%s222_s11 + $0x40] sm:$0xf]  ;;  %v233_v4 = vld [vmem:[%s222_s11 + $0x48] sm:$0xf]  ;;  %v230_v5 = vld [vmem:[%s222_s11 + $0x30] sm:$0xff] }
  0x19   : > { %902 = vmatpush.msk.msra.mxu0 %vm244_vm1, %v232_v3  ;;  %904 = vmatpush.msk.msra.mxu1 %vm244_vm1, %v233_v4  ;;  %v231_v6 = vld [vmem:[%s222_s11 + $0x38] sm:$0xff]  ;;  %v228_v7 = vld [vmem:[%s222_s11 + $0x20] sm:$0xff]  ;;  %v229_v8 = vld [vmem:[%s222_s11 + $0x28] sm:$0xff] }
  0x1a   : > { %v226_v10 = vld [vmem:[%s222_s11 + $0x10] sm:$0xff]  ;;  %v227_v11 = vld [vmem:[%s222_s11 + $0x18] sm:$0xff]  ;;  %v224_v12 = vld [vmem:[%s222_s11] sm:$0xff] }
  0x1b   : > { %263 = vmatpush.msra.mxu0 %v230_v5  ;;  %283 = vmatpush.msra.mxu1 %v231_v6  ;;  %v302_v9 = vld [vmem:[#allocation2 + $0x10] sm:$0xff]  ;;  %v225_v13 = vld [vmem:[%s222_s11 + $0x8] sm:$0xff]  ;;  %s900_s11 = sshll.u32 %s215_s10, 4 }
  0x1c   : > { %410 = vrot.lane.b32.xlu2 %v302_v9, %s1096_s12  ;;  %310 = vrot.lane.b32.xlu1 %v302_v9, %s1097_s13  ;;  %v923_v5 = vld [vmem:[%s1285_s3 + $0x30] sm:$0xff] }
  0x1d   : > { %264 = vmatpush.msra.mxu0 %v228_v7  ;;  %284 = vmatpush.msra.mxu1 %v229_v8  ;;  %v920_v8 = vld [vmem:[%s1285_s3 + $0x28] sm:$0xff] }
  0x1f   : > { %265 = vmatpush.msra.mxu0 %v226_v10  ;;  %285 = vmatpush.msra.mxu1 %v227_v11 }
  0x21   : > { %266 = vmatpush.msra.mxu0 %v224_v12  ;;  %286 = vmatpush.msra.mxu1 %v225_v13  ;;  %v926_v13 = vld [vmem:[%s1285_s3 + $0x38] sm:$0xff] }
  0x22   : > { %903 = vmatmul.msk.f32.vlgmr.msra.gmra.mxu0 %vm240_vm2, %v223_v14  ;;  %905 = vmatmul.msk.f32.vlgmr.msra.gmra.mxu1 %vm240_vm2, %v223_v14 }
  0x24   : > { %526 = vrot.lane.b32.xlu2 %v302_v9, %s1098_s16  ;;  %584 = vrot.lane.b32.xlu1 %v302_v9, %s1099_s17 }
  0x76   : > { %v411_v23 = vpop.permute.xlu2 %410 }
  0x7e   : > { %v527_v25 = vpop.permute.xlu2 %526 }
  0x87   : > { %v238_v15 = vpop.permute.xlu0 %237 }
  0x8e   : > { %v311_v24 = vpop.permute.xlu1 %310 }
  0x96   : > { %v1195_v26 = vpop.permute.xlu1 %584 }
  0x9f   : > { %v268_v16 = vpop.f32.mrf.mxu0  ;;  %v288_v17 = vpop.f32.mrf.mxu1 }
  0xa0   : > { %v269_v18 = vadd.f32 %v268_v16, %v238_v15  ;;  %v289_v19 = vadd.f32 %v288_v17, %v238_v15  ;;  %v929_v16 = vld [vmem:[%s1285_s3 + $0x40] sm:$0xff] }
  0xa2   : > { %v291_v20 = vmax.f32 %v269_v18, 0.0  ;;  %v292_v21 = vmax.f32 %v289_v19, 0.0 }
  0xa4   : > { %v999_v22 = vpack.i.bf16 %v292_v21, %v291_v20 }
  0xa6   : > { %1000 = vrot.lane.b32.xlu2 %v999_v22, %s1100_s23  ;;  %995 = vrot.lane.b32.xlu1 %v999_v22, %s1096_s12  ;;  %s937_s12 = sshll.u32 %s1155_s22, 4  ;;  %s821_s22 = scalar_lea.sflag [#allocation4], %s215_s10 }
  0xa7   : > { %990 = vrot.lane.b32.xlu0 %v999_v22, %s1097_s13  ;;  %s832_s15 = scalar_lea.hbm %s1287_s5, %s937_s12 }
  0xae   : > { %1015 = vrot.lane.b32.xlu2 %v999_v22, %s1101_s25  ;;  %1005 = vrot.lane.b32.xlu1 %v999_v22, %s1098_s16  ;;  %s217_s16 = scalar_lea.vmem [#allocation3], %s900_s11 }
  0xaf   : > { %468 = vrot.lane.b32.xlu0 %v302_v9, %s1100_s23  ;;  %s836_s23 = sshll.u32 %s832_s15, 4  ;;  %s837_s23 = int_to_ptr.hbm [resolvable:$true] %s836_s23 }
  0xb6   : > { %1020 = vrot.lane.b32.xlu1 %v999_v22, %s1102_s26  ;;  %700 = vrot.lane.b32.xlu2 %v302_v9, %s1102_s26 }
  0xb7   : > { %1010 = vrot.lane.b32.xlu0 %v999_v22, %s1099_s17  ;;  %s834_s17 = sshll.u32 %s217_s16, 4  ;;  %s835_s17 = int_to_ptr.vmem [resolvable:$true] %s834_s17 }
  0xbe   : > { %758 = vrot.lane.b32.xlu1 %v302_v9, %s1103_s30  ;;  %813 = vperm.xlu2 %1029, %v810_v44  }
  0xbf   : > { %642 = vrot.lane.b32.xlu0 %v302_v9, %s1101_s25  ;;  %s1044_s25 = sshra.s32 %s837_s23, 4  ;;  %s1045_s25 = int_to_ptr.hbm [resolvable:$true] %s1044_s25 }
  0xc0   : > { %s1046_s26 = scalar_lea.hbm %s1045_s25, 16  ;;  %p1051_p0 = scmp.lt.s32.totalorder %s1045_s25, %s1287_s5 }
  0xc1   : > { %p1047_p11 = scmp.ne.s32.totalorder %s1045_s25, %s1046_s26  ;;  %p1052_p1 = scmp.lt.s32.totalorder %s1050_s7, %s1046_s26 }
  0xc3   : > { %p1048_p12 = pnand %p1047_p11, %p1172_p5  ;;  %p1053_p2 = por %p1052_p1, %p1051_p0 }
  0xc5   : > { %p1049_p13 = pneg %p1048_p12 }
  0xc7   : > { %1025 = vrot.lane.b32.xlu0 %v999_v22, %s1103_s30  ;;  %p1054_p3 = pnand %p1053_p2, %p1049_p13 }
 0x100   : > { %v1001_v27 = vpop.permute.xlu2 %1000 }
 0x101   : > { %v1003_v34 = vunpack.i.h.bf16 %v1001_v27  ;;  %v1002_v35 = vunpack.i.l.bf16 %v1001_v27 }
 0x103   : > { %v471_v43 = vsel %vm470_vm6, %v1002_v35, %v1003_v34 }
 0x108   : > { %v1016_v41 = vpop.permute.xlu2 %1015 }
 0x109   : > { %v1018_v45 = vunpack.i.h.bf16 %v1016_v41  ;;  %v1017_v46 = vunpack.i.l.bf16 %v1016_v41 }
 0x10b   : > { %v645_v55 = vsel %vm644_vm8, %v1017_v46, %v1018_v45 }
 0x110   : > { %v701_v61 = vpop.permute.xlu2 %700 }
 0x118   : > { %v996_v28 = vpop.permute.xlu1 %995 }
 0x119   : > { %v998_v29 = vunpack.i.h.bf16 %v996_v28  ;;  %v997_v30 = vunpack.i.l.bf16 %v996_v28  ;;  %v991_v31 = vpop.permute.xlu0 %990 }
 0x11a   : > { %v993_v32 = vunpack.i.h.bf16 %v991_v31  ;;  %v992_v33 = vunpack.i.l.bf16 %v991_v31 }
 0x11b   : > { %v413_v36 = vsel %vm412_vm3, %v997_v30, %v998_v29  ;;  %v414_v37 = vsel %vm412_vm3, %v998_v29, %v411_v23 }
 0x11c   : > { %v313_v39 = vsel %vm312_vm4, %v992_v33, %v993_v32  ;;  %v314_v40 = vsel %vm312_vm4, %v993_v32, %v311_v24  ;;  %435 = vmatpush.msrb.mxu0 %v413_v36  ;;  %455 = vmatpush.msrb.mxu1 %v414_v37 }
 0x11d   : > { %336 = vmatpush.msra.mxu2 %v313_v39  ;;  %356 = vmatpush.msra.mxu3 %v314_v40 }
 0x11e   : > { %907 = vmatmul.msk.f32.vlgmr.msra.gmra.mxu2 %vm317_vm5, %v906_v38  ;;  %908 = vmatmul.msk.f32.vlgmr.msra.gmra.mxu3 %vm317_vm5, %v906_v38 }
 0x11f   : > { %379 = vmatpush.msrb.mxu2 %v291_v20  ;;  %399 = vmatpush.msrb.mxu3 %v292_v21 }
 0x120   : > { %v1006_v47 = vpop.permute.xlu1 %1005  ;;  %912 = vmatmul.msk.f32.vlgmr.msrb.gmra.mxu0 %vm317_vm5, %v911_v42  ;;  %913 = vmatmul.msk.f32.vlgmr.msrb.gmra.mxu1 %vm317_vm5, %v911_v42 }
 0x121   : > { %493 = vmatpush.msra.mxu2 %v471_v43  ;;  %v1008_v48 = vunpack.i.h.bf16 %v1006_v47  ;;  %v1007_v49 = vunpack.i.l.bf16 %v1006_v47  ;;  %v469_v50 = vpop.permute.xlu0 %468 }
 0x122   : > { %v472_v51 = vsel %vm470_vm6, %v1003_v34, %v469_v50 }
 0x123   : > { %513 = vmatpush.msra.mxu3 %v472_v51  ;;  %v529_v52 = vsel %vm528_vm7, %v1007_v49, %v1008_v48  ;;  %v530_v53 = vsel %vm528_vm7, %v1008_v48, %v527_v25  ;;  %v814_v49 = vpop.permute.xlu2 %813 }
 0x124   : > { %551 = vmatpush.msra.mxu0 %v529_v52  ;;  %571 = vmatpush.msra.mxu1 %v530_v53 }
 0x126   : > { %667 = vmatpush.msrb.mxu0 %v645_v55  ;;  %909 = vmatmul.msk.f32.vlgmr.msrb.gmra.mxu2 %vm317_vm5, %v297_v54 }
 0x127   : > { %910 = vmatmul.msk.f32.vlgmr.msrb.gmra.mxu3 %vm317_vm5, %v297_v54 }
 0x128   : > { %v1021_v57 = vpop.permute.xlu1 %1020  ;;  %918 = vmatmul.msk.f32.vlgmr.msra.gmra.mxu0 %vm317_vm5, %v917_v56  ;;  %919 = vmatmul.msk.f32.vlgmr.msra.gmra.mxu1 %vm317_vm5, %v917_v56 }
 0x129   : > { %v1023_v58 = vunpack.i.h.bf16 %v1021_v57  ;;  %v1022_v59 = vunpack.i.l.bf16 %v1021_v57  ;;  %v1011_v60 = vpop.permute.xlu0 %1010 }
 0x12a   : > { %v1013_v62 = vunpack.i.h.bf16 %v1011_v60  ;;  %v1012_v63 = vunpack.i.l.bf16 %v1011_v60 }
 0x12b   : > { %v704_v1 = vsel %vm702_vm9, %v1023_v58, %v701_v61  ;;  %v703_v4 = vsel %vm702_vm9, %v1022_v59, %v1023_v58 }
 0x12c   : > { %v587_v2 = vsel %vm586_vm10, %v1012_v63, %v1013_v62  ;;  %v588_v3 = vsel %vm586_vm10, %v1013_v62, %v1195_v26 }
 0x12d   : > { %609 = vmatpush.msrb.mxu2 %v587_v2  ;;  %629 = vmatpush.msrb.mxu3 %v588_v3 }
 0x12e   : > { %915 = vmatmul.msk.f32.vlgmr.msra.gmra.mxu2 %vm317_vm5, %v914_v0 }
 0x12f   : > { %916 = vmatmul.msk.f32.vlgmr.msra.gmra.mxu3 %vm317_vm5, %v914_v0  ;;  %725 = vmatpush.msra.mxu2 %v703_v4 }
 0x130   : > { %745 = vmatpush.msra.mxu3 %v704_v1  ;;  %924 = vmatmul.msk.f32.vlgmr.msrb.gmra.mxu0 %vm317_vm5, %v923_v5  ;;  %v759_v10 = vpop.permute.xlu1 %758 }
 0x131   : > { %v643_v6 = vpop.permute.xlu0 %642 }
 0x132   : > { %v646_v7 = vsel %vm644_vm8, %v1018_v45, %v643_v6 }
 0x133   : > { %687 = vmatpush.msrb.mxu1 %v646_v7 }
 0x134   : > { %925 = vmatmul.msk.f32.vlgmr.msrb.gmra.mxu1 %vm317_vm5, %v923_v5 }
 0x136   : > { %921 = vmatmul.msk.f32.vlgmr.msrb.gmra.mxu2 %vm317_vm5, %v920_v8 }
 0x137   : > { %922 = vmatmul.msk.f32.vlgmr.msrb.gmra.mxu3 %vm317_vm5, %v920_v8 }
 0x139   : > { %v1026_v9 = vpop.permute.xlu0 %1025 }
 0x13a   : > { %v1028_v11 = vunpack.i.h.bf16 %v1026_v9  ;;  %v1027_v12 = vunpack.i.l.bf16 %v1026_v9 }
 0x13c   : > { %v762_v14 = vsel %vm760_vm11, %v1028_v11, %v759_v10  ;;  %v761_v15 = vsel %vm760_vm11, %v1027_v12, %v1028_v11 }
 0x13d   : > { %783 = vmatpush.msra.mxu0 %v761_v15  ;;  %803 = vmatpush.msra.mxu1 %v762_v14 }
 0x13e   : > { %927 = vmatmul.msk.f32.vlgmr.msra.gmra.mxu2 %vm317_vm5, %v926_v13  ;;  %930 = vmatmul.msk.f32.vlgmr.msra.gmra.mxu0 %vm317_vm5, %v929_v16 }
 0x13f   : > { %928 = vmatmul.msk.f32.vlgmr.msra.gmra.mxu3 %vm317_vm5, %v926_v13  ;;  %931 = vmatmul.msk.f32.vlgmr.msra.gmra.mxu1 %vm317_vm5, %v929_v16 }
 0x19d   : > { %v437_v19 = vpop.f32.mrf.mxu0  ;;  %v457_v20 = vpop.f32.mrf.mxu1 }
 0x1a1   : > { %v338_v17 = vpop.f32.mrf.mxu2  ;;  %v358_v18 = vpop.f32.mrf.mxu3 }
 0x1a5   : > { %v553_v23 = vpop.f32.mrf.mxu0  ;;  %v573_v24 = vpop.f32.mrf.mxu1 }
 0x1a9   : > { %v381_v21 = vpop.f32.mrf.mxu2 }
 0x1aa   : > { %v401_v22 = vpop.f32.mrf.mxu3  ;;  %v382_v25 = vadd.f32 %v381_v21, %v338_v17 }
 0x1ab   : > { %v402_v26 = vadd.f32 %v401_v22, %v358_v18 }
 0x1ac   : > { %v460_v29 = vadd.f32 %v437_v19, %v382_v25 }
 0x1ad   : > { %v461_v30 = vadd.f32 %v457_v20, %v402_v26  ;;  %v669_v33 = vpop.f32.mrf.mxu0 }
 0x1b1   : > { %v495_v27 = vpop.f32.mrf.mxu2  ;;  %v689_v34 = vpop.f32.mrf.mxu1 }
 0x1b2   : > { %v515_v28 = vpop.f32.mrf.mxu3  ;;  %v518_v31 = vadd.f32 %v495_v27, %v460_v29 }
 0x1b3   : > { %v519_v32 = vadd.f32 %v515_v28, %v461_v30 }
 0x1b4   : > { %v576_v37 = vadd.f32 %v553_v23, %v518_v31 }
 0x1b5   : > { %v577_v38 = vadd.f32 %v573_v24, %v519_v32 }
 0x1b9   : > { %v611_v35 = vpop.f32.mrf.mxu2 }
 0x1ba   : > { %v631_v36 = vpop.f32.mrf.mxu3  ;;  %v634_v39 = vadd.f32 %v611_v35, %v576_v37 }
 0x1bb   : > { %v635_v40 = vadd.f32 %v631_v36, %v577_v38  ;;  %v785_v43 = vpop.f32.mrf.mxu0 }
 0x1bc   : > { %v692_v41 = vadd.f32 %v669_v33, %v634_v39  ;;  %v805_v44 = vpop.f32.mrf.mxu1 }
 0x1bd   : > { %v693_v42 = vadd.f32 %v689_v34, %v635_v40 }
 0x1c1   : > { %v727_v45 = vpop.f32.mrf.mxu2 }
 0x1c2   : > { %v747_v46 = vpop.f32.mrf.mxu3  ;;  %v750_v47 = vadd.f32 %v727_v45, %v692_v41 }
 0x1c3   : > { %v751_v48 = vadd.f32 %v747_v46, %v693_v42 }
 0x1c4   : > { %v808_v50 = vadd.f32 %v785_v43, %v750_v47 }
 0x1c5   : > { %v809_v51 = vadd.f32 %v805_v44, %v751_v48 }
 0x1c6   : > { %v816_v52 = vadd.f32 %v814_v49, %v808_v50 }
 0x1c7   : > { %v817_v53 = vadd.f32 %v814_v49, %v809_v51 }
 0x1c8   : > { %818 = vst [vmem:[%s217_s16] sm:$0xff] %v816_v52 }
 0x1c9   : > { %819 = vst [vmem:[%s217_s16 + $0x8] sm:$0xff] %v817_v53 }
 0x1ca   : > { %1057 = shalt.err (!%p1054_p3)
}
 0x1cb   : > { %939 = dma.vmem_to_hbm [thread:$0]  (%p1172_p5), %s835_s17, 256, %s837_s23, %s821_s22  }
 0x1cc PF: > { %p945_p4 = scmp.ge.s32.totalorder %s1092_s21, 2  ;;  %s848_s10 = sand.u32 1, %s1080_s18  }
 0x1cd   : > { %s849_s11 = scalar_lea.sflag [#allocation4], %s848_s10 }
 0x1ce   : > { %p942_p7 = pnand %p945_p4, %p1176_p6 }
 0x1d0   : > { %p943_p8 = pneg %p942_p7 }
 0x1d2   : > { %1075 = dma.done.wait (%p943_p8), %s849_s11, 256  }
 0x1d3   : > { %1077 = vsyncadd (%p943_p8), %s849_s11, 4294967040  ;;  %p15_p9 = scmp.ge.s32.totalorder %s1159_s24, 4   ;;  %s1290_s18 = smov %s1084_s19 }
 0x1d4   : > { %s1291_s19 = smov %s1088_s20  ;;  %s1292_s20 = smov %s1170_s27 }
 0x1d5   : > { %s1293_s21 = smov %s1159_s24  ;;  %17 = sbr.rel (!%p15_p9) target bundleno = 3 (0x3), region = 83 }
 0x1da   :  { %855 = vsyncpa [#allocation4], 1 }
 0x1db   :  { %857 = vsyncpa [#allocation4 + $0x1], 1 }

</bundles_post_ra>
